<compile_context>
chip_gen: v5e
topology: v5e:2x2
jax: 0.10.0
libtpu: 0.0.40
codegen_flags: <defaults>
</compile_context>

<pallas_src>
import functools

import jax
import jax.numpy as jnp
from jax.experimental import pallas as pl
from jax.experimental.pallas import tpu as pltpu

LN_EPS = 1e-5  # torch.nn.LayerNorm default


# ----------------------------- in-kernel helpers -----------------------------

def _layernorm(x, gamma, beta):
  # PyTorch LayerNorm: biased variance over last dim.
  mean = jnp.mean(x, axis=-1, keepdims=True)
  var = jnp.mean(jnp.square(x - mean), axis=-1, keepdims=True)
  return (x - mean) * jax.lax.rsqrt(var + LN_EPS) * gamma + beta


def _erf(x):
  # Abramowitz & Stegun 7.1.26 (|err| < 1.5e-7): exact-GELU semantics without relying on an
  # erf lowering inside Mosaic (uses only exp / mul / add).
  a1, a2, a3, a4, a5 = 0.254829592, -0.284496736, 1.421413741, -1.453152027, 1.061405429
  p = 0.3275911
  sign = jnp.where(x >= 0.0, 1.0, -1.0)
  ax = jnp.abs(x)
  t = 1.0 / (1.0 + p * ax)
  poly = t * (a1 + t * (a2 + t * (a3 + t * (a4 + t * a5))))
  return sign * (1.0 - poly * jnp.exp(-ax * ax))


def _gelu_exact(x):
  # nn.GELU() default ('none' approximation): 0.5 * x * (1 + erf(x / sqrt(2)))
  return 0.5 * x * (1.0 + _erf(x * (2.0 ** -0.5)))


# --------------------------------- kernel ------------------------------------

def _encoder_kernel(x_ref, vecs_ref, b1_ref, wqkv_ref, wout_ref, w1_ref, w2_ref,
                    o_ref, act_ref, *, heads, dim_head):
  """Grid = (batch, layer). One grid step = one encoder layer for one batch element.

  Activations for the current batch element stay resident in act_ref (f32 VMEM) across the
  whole layer loop; per-layer weights are streamed (double-buffered) one layer per step.
  """
  layer = pl.program_id(1)

  @pl.when(layer == 0)
  def _():
    act_ref[...] = x_ref[0].astype(jnp.float32)

  x = act_ref[...]                                   # (N, D), f32
  N = x.shape[0]
  H, dh = heads, dim_head
  inner = H * dh

  vecs = vecs_ref[0]                                 # (6, D), f32
  ln1_g, ln1_b = vecs[0:1], vecs[1:2]
  bout = vecs[2:3]
  ln2_g, ln2_b = vecs[3:4], vecs[4:5]
  b2 = vecs[5:6]
  b1 = b1_ref[0]                                     # (1, mlp), f32

  # ------------- PreNorm multi-head attention + residual -------------
  xn = _layernorm(x, ln1_g, ln1_b).astype(jnp.bfloat16)             # (N, D)
  # One dense lane-wide matmul for Q, K and V of all heads.
  qkv = jnp.dot(xn, wqkv_ref[0], preferred_element_type=jnp.float32)  # (N, 3*inner), f32

  def split_heads(base):  # lane-slice per head -> (H, N, dh)
    parts = [qkv[:, base + h * dh: base + (h + 1) * dh] for h in range(H)]
    return jnp.stack(parts, axis=0).astype(jnp.bfloat16)

  q = split_heads(0)                                 # (H, N, dh) bf16
  k = split_heads(inner)
  v = split_heads(2 * inner)

  dots = jnp.einsum("hqd,hkd->hqk", q, k,
                    preferred_element_type=jnp.float32) * (dh ** -0.5)  # (H, N, N) f32
  dots = dots - jnp.max(dots, axis=-1, keepdims=True)
  e = jnp.exp(dots)
  attn = e * pl.reciprocal(jnp.sum(e, axis=-1, keepdims=True), approx=False)
  out = jnp.einsum("hqk,hkd->hqd", attn.astype(jnp.bfloat16), v,
                   preferred_element_type=jnp.float32)              # (H, N, dh) f32
  # Merge heads back to a lane-dense (N, inner) tensor and do one dense output projection.
  out = jnp.concatenate([out[h] for h in range(H)], axis=-1).astype(jnp.bfloat16)
  proj = jnp.dot(out, wout_ref[0], preferred_element_type=jnp.float32)  # (N, D)
  x = x + proj + bout

  # ------------------ PreNorm feed-forward + residual -----------------
  xn2 = _layernorm(x, ln2_g, ln2_b).astype(jnp.bfloat16)
  h = jnp.dot(xn2, w1_ref[0], preferred_element_type=jnp.float32) + b1   # (N, mlp) f32
  h = _gelu_exact(h).astype(jnp.bfloat16)
  y = jnp.dot(h, w2_ref[0], preferred_element_type=jnp.float32) + b2     # (N, D) f32
  x = x + y

  act_ref[...] = x

  @pl.when(layer == pl.num_programs(1) - 1)
  def _():
    o_ref[0] = x.astype(o_ref.dtype)


# -------------------------------- wrapper ------------------------------------

def transformer_encoder(x, layers, *, heads, dim_head):
  """Forward of TransformerEncoder: per layer, x = attn(norm(x)) + x; x = ffn(norm(x)) + x."""
  B, N, D = x.shape
  H, dh = heads, dim_head
  inner = H * dh
  depth = len(layers)
  mlp = layers[0]["w1"].shape[1]

  # Pack the small per-layer vectors into one (depth, 6, D) input; biases/gains stay f32.
  vecs = jnp.stack([jnp.concatenate(
      [p["ln1_g"], p["ln1_b"], p["bout"], p["ln2_g"], p["ln2_b"], p["b2"]], axis=0)
      for p in layers]).astype(jnp.float32)                          # (depth, 6, D)
  b1 = jnp.stack([p["b1"] for p in layers]).astype(jnp.float32)      # (depth, 1, mlp)
  # Matmul weights pre-cast to bf16 (MXU-native on v5e/v6e/v7x, halves weight DMA bytes).
  wqkv = jnp.stack([p["wqkv"] for p in layers]).astype(jnp.bfloat16)  # (depth, D, 3*inner)
  wout = jnp.stack([p["wout"] for p in layers]).astype(jnp.bfloat16)  # (depth, inner, D)
  w1 = jnp.stack([p["w1"] for p in layers]).astype(jnp.bfloat16)      # (depth, D, mlp)
  w2 = jnp.stack([p["w2"] for p in layers]).astype(jnp.bfloat16)      # (depth, mlp, D)

  kernel = functools.partial(_encoder_kernel, heads=H, dim_head=dh)

  def per_layer(shape):  # streamed once per layer (index depends on the layer axis only)
    return pl.BlockSpec((1,) + shape, lambda b, l: (l, 0, 0))

  out = pl.pallas_call(
      kernel,
      out_shape=jax.ShapeDtypeStruct((B, N, D), x.dtype),
      grid=(B, depth),
      in_specs=[
          pl.BlockSpec((1, N, D), lambda b, l: (b, 0, 0)),   # x: fetched once per batch elem
          per_layer((6, D)),                                 # packed LN gains/betas + biases
          per_layer((1, mlp)),                               # b1
          per_layer((D, 3 * inner)),                         # wqkv (merged heads, lane-dense)
          per_layer((inner, D)),                             # wout
          per_layer((D, mlp)),                               # w1
          per_layer((mlp, D)),                               # w2
      ],
      # Constant block index along the layer axis => output block stays resident in VMEM for
      # the whole layer loop and is written back to HBM once per batch element.
      out_specs=pl.BlockSpec((1, N, D), lambda b, l: (b, 0, 0)),
      scratch_shapes=[pltpu.VMEM((N, D), jnp.float32)],       # resident f32 activations
      compiler_params=pltpu.CompilerParams(
          dimension_semantics=("parallel", "arbitrary"),
          vmem_limit_bytes=48 * 1024 * 1024),
  )(x, vecs, b1, wqkv, wout, w1, w2)
  return out


# ------------------------------ pure-JAX reference ----------------------------

def _reference_encoder(x, layers, *, heads, dim_head):
  inner = heads * dim_head
  for p in layers:
    xn = _layernorm(x, p["ln1_g"][0], p["ln1_b"][0])
    qkv = xn @ p["wqkv"]
    q, k, v = jnp.split(qkv, 3, axis=-1)
    B, N, _ = q.shape
    sh = lambda t: t.reshape(B, N, heads, dim_head).transpose(0, 2, 1, 3)
    q, k, v = sh(q), sh(k), sh(v)
    dots = jnp.einsum("bhqd,bhkd->bhqk", q, k) * dim_head ** -0.5
    attn = jax.nn.softmax(dots, axis=-1)
    out = jnp.einsum("bhqk,bhkd->bhqd", attn, v)
    out = out.transpose(0, 2, 1, 3).reshape(B, N, inner)
    x = out @ p["wout"] + p["bout"][0] + x
    xn = _layernorm(x, p["ln2_g"][0], p["ln2_b"][0])
    h = jax.nn.gelu(xn @ p["w1"] + p["b1"][0], approximate=False)
    x = h @ p["w2"] + p["b2"][0] + x
  return x


# ---------------------------------- main --------------------------------------

def _init_params(key, depth, dim, heads, dim_head, mlp_dim):
  inner = heads * dim_head
  layers = []
  for _ in range(depth):
    keys = jax.random.split(key, 9)
    key = keys[0]
    s = 0.02
    layers.append(dict(
        ln1_g=1.0 + s * jax.random.normal(keys[1], (1, dim), jnp.float32),
        ln1_b=s * jax.random.normal(keys[2], (1, dim), jnp.float32),
        wqkv=s * jax.random.normal(keys[3], (dim, 3 * inner), jnp.float32),
        wout=s * jax.random.normal(keys[4], (inner, dim), jnp.float32),
        bout=s * jax.random.normal(keys[5], (1, dim), jnp.float32),
        ln2_g=1.0 + s * jax.random.normal(keys[6], (1, dim), jnp.float32),
        ln2_b=s * jax.random.normal(keys[7], (1, dim), jnp.float32),
        w1=s * jax.random.normal(keys[8], (dim, mlp_dim), jnp.float32),
        b1=jnp.zeros((1, mlp_dim), jnp.float32),
        w2=s * jax.random.normal(jax.random.fold_in(key, 17), (mlp_dim, dim), jnp.float32),
        b2=jnp.zeros((1, dim), jnp.float32),
    ))
  return layers


if __name__ == "__main__":
  B, N, D = 2, 8, 32
  depth, heads, dim_head, mlp_dim = 2, 4, 8, 64

  key = jax.random.PRNGKey(0)
  kx, kp = jax.random.split(key)
  x = jax.random.normal(kx, (B, N, D), jnp.float32)
  layers = _init_params(kp, depth, D, heads, dim_head, mlp_dim)

  out = transformer_encoder(x, layers, heads=heads, dim_head=dim_head)
  out = jax.block_until_ready(out)

  ref = _reference_encoder(x, layers, heads=heads, dim_head=dim_head)
  assert out.shape == (B, N, D)
  max_err = float(jnp.max(jnp.abs(out - ref)))
  # bf16 MXU operands (f32 accumulation) vs f32 reference -> a few e-4 abs error here.
  assert jnp.allclose(out, ref, atol=3e-3, rtol=3e-3), f"max abs err {max_err}"

  print("KERNEL_OK")
</pallas_src>

<mosaic_0001>
module attributes {stable_mosaic.version = 11 : i64} {
  func.func @_encoder_kernel(%arg0: i32, %arg1: i32, %arg2: memref<1x8x32xf32, #tpu.memory_space<vmem>>, %arg3: memref<1x6x32xf32, #tpu.memory_space<vmem>>, %arg4: memref<1x1x64xf32, #tpu.memory_space<vmem>>, %arg5: memref<1x32x96xbf16, #tpu.memory_space<vmem>>, %arg6: memref<1x32x32xbf16, #tpu.memory_space<vmem>>, %arg7: memref<1x32x64xbf16, #tpu.memory_space<vmem>>, %arg8: memref<1x64x32xbf16, #tpu.memory_space<vmem>>, %arg9: memref<1x8x32xf32, #tpu.memory_space<vmem>>, %arg10: memref<8x32xf32, #tpu.memory_space<vmem>>) attributes {dimension_semantics = [#tpu.dimension_semantics<parallel>, #tpu.dimension_semantics<arbitrary>], iteration_bounds = array<i64: 2, 2>, scalar_prefetch = 0 : i64, scratch_operands = 1 : i64, tpu.core_type = #tpu.core_type<tc>, window_params = [{transform_indices = @transform_0, window_bounds = array<i64: 1, 8, 32>}, {transform_indices = @transform_1, window_bounds = array<i64: 1, 6, 32>}, {transform_indices = @transform_2, window_bounds = array<i64: 1, 1, 64>}, {transform_indices = @transform_3, window_bounds = array<i64: 1, 32, 96>}, {transform_indices = @transform_4, window_bounds = array<i64: 1, 32, 32>}, {transform_indices = @transform_5, window_bounds = array<i64: 1, 32, 64>}, {transform_indices = @transform_6, window_bounds = array<i64: 1, 64, 32>}, {transform_indices = @transform_7, window_bounds = array<i64: 1, 8, 32>}]} {
    %c0_i32 = arith.constant 0 : i32
    %0 = arith.cmpi eq, %arg1, %c0_i32 : i32
    %1 = arith.extui %0 : i1 to i32
    %c0_i32_0 = arith.constant 0 : i32
    %2 = arith.cmpi ne, %1, %c0_i32_0 : i32
    scf.if %2 {
      %c0_57 = arith.constant 0 : index
      %c0_58 = arith.constant 0 : index
      %c0_59 = arith.constant 0 : index
      %181 = vector.load %arg2[%c0_57, %c0_58, %c0_59] : memref<1x8x32xf32, #tpu.memory_space<vmem>>, vector<1x8x32xf32>
      %182 = vector.shape_cast %181 : vector<1x8x32xf32> to vector<8x32xf32>
      %c0_60 = arith.constant 0 : index
      %c0_61 = arith.constant 0 : index
      %183 = vector.load %arg10[%c0_60, %c0_61] : memref<8x32xf32, #tpu.memory_space<vmem>>, vector<8x32xf32>
      tpu.vector_store %arg10[%c0_60, %c0_61], %182 {strides = array<i32>} : memref<8x32xf32, #tpu.memory_space<vmem>>, vector<8x32xf32>,
    } else {
    }
    %c0 = arith.constant 0 : index
    %c0_1 = arith.constant 0 : index
    %3 = vector.load %arg10[%c0, %c0_1] : memref<8x32xf32, #tpu.memory_space<vmem>>, vector<8x32xf32>
    %c0_2 = arith.constant 0 : index
    %c0_3 = arith.constant 0 : index
    %c0_4 = arith.constant 0 : index
    %4 = vector.load %arg3[%c0_2, %c0_3, %c0_4] : memref<1x6x32xf32, #tpu.memory_space<vmem>>, vector<1x6x32xf32>
    %5 = vector.shape_cast %4 : vector<1x6x32xf32> to vector<6x32xf32>
    %6 = vector.extract_strided_slice %5 {offsets = [0, 0], sizes = [1, 32], strides = [1, 1]} : vector<6x32xf32> to vector<1x32xf32>
    %7 = vector.extract_strided_slice %5 {offsets = [1, 0], sizes = [1, 32], strides = [1, 1]} : vector<6x32xf32> to vector<1x32xf32>
    %8 = vector.extract_strided_slice %5 {offsets = [2, 0], sizes = [1, 32], strides = [1, 1]} : vector<6x32xf32> to vector<1x32xf32>
    %9 = vector.extract_strided_slice %5 {offsets = [3, 0], sizes = [1, 32], strides = [1, 1]} : vector<6x32xf32> to vector<1x32xf32>
    %10 = vector.extract_strided_slice %5 {offsets = [4, 0], sizes = [1, 32], strides = [1, 1]} : vector<6x32xf32> to vector<1x32xf32>
    %11 = vector.extract_strided_slice %5 {offsets = [5, 0], sizes = [1, 32], strides = [1, 1]} : vector<6x32xf32> to vector<1x32xf32>
    %c0_5 = arith.constant 0 : index
    %c0_6 = arith.constant 0 : index
    %c0_7 = arith.constant 0 : index
    %12 = vector.load %arg4[%c0_5, %c0_6, %c0_7] : memref<1x1x64xf32, #tpu.memory_space<vmem>>, vector<1x1x64xf32>
    %13 = vector.shape_cast %12 : vector<1x1x64xf32> to vector<1x64xf32>
    %cst = arith.constant dense<0.000000e+00> : vector<8xf32>
    %14 = vector.multi_reduction <add>, %3, %cst [1] : vector<8x32xf32> to vector<8xf32>
    %15 = vector.shape_cast %14 : vector<8xf32> to vector<8x1xf32>
    %cst_8 = arith.constant 3.200000e+01 : f32
    %16 = vector.broadcast %cst_8 : f32 to vector<8x1xf32>
    %17 = arith.divf %15, %16 : vector<8x1xf32>
    %18 = vector.broadcast %17 : vector<8x1xf32> to vector<8x32xf32>
    %19 = arith.subf %3, %18 : vector<8x32xf32>
    %20 = arith.mulf %19, %19 : vector<8x32xf32>
    %cst_9 = arith.constant dense<0.000000e+00> : vector<8xf32>
    %21 = vector.multi_reduction <add>, %20, %cst_9 [1] : vector<8x32xf32> to vector<8xf32>
    %22 = vector.shape_cast %21 : vector<8xf32> to vector<8x1xf32>
    %cst_10 = arith.constant 3.200000e+01 : f32
    %23 = vector.broadcast %cst_10 : f32 to vector<8x1xf32>
    %24 = arith.divf %22, %23 : vector<8x1xf32>
    %25 = vector.broadcast %17 : vector<8x1xf32> to vector<8x32xf32>
    %26 = arith.subf %3, %25 : vector<8x32xf32>
    %cst_11 = arith.constant 9.99999974E-6 : f32
    %27 = vector.broadcast %cst_11 : f32 to vector<8x1xf32>
    %28 = arith.addf %24, %27 : vector<8x1xf32>
    %29 = math.rsqrt %28 : vector<8x1xf32>
    %30 = vector.broadcast %29 : vector<8x1xf32> to vector<8x32xf32>
    %31 = arith.mulf %26, %30 : vector<8x32xf32>
    %32 = vector.broadcast %6 : vector<1x32xf32> to vector<8x32xf32>
    %33 = arith.mulf %31, %32 : vector<8x32xf32>
    %34 = vector.broadcast %7 : vector<1x32xf32> to vector<8x32xf32>
    %35 = arith.addf %33, %34 : vector<8x32xf32>
    %36 = arith.truncf %35 : vector<8x32xf32> to vector<8x32xbf16>
    %c0_12 = arith.constant 0 : index
    %c0_13 = arith.constant 0 : index
    %c0_14 = arith.constant 0 : index
    %37 = vector.load %arg5[%c0_12, %c0_13, %c0_14] : memref<1x32x96xbf16, #tpu.memory_space<vmem>>, vector<1x32x96xbf16>
    %38 = vector.shape_cast %37 : vector<1x32x96xbf16> to vector<32x96xbf16>
    %cst_15 = arith.constant dense<0.000000e+00> : vector<8x96xf32>
    %39 = tpu.matmul %36, %38, %cst_15 {dimension_numbers = #tpu.dot_dimension_numbers<[1], [0], [0], [1], [0, 0, 1, 1], [], []>} : vector<8x32xbf16>, vector<32x96xbf16>, vector<8x96xf32> -> vector<8x96xf32>
    %40 = vector.extract_strided_slice %39 {offsets = [0, 0], sizes = [8, 8], strides = [1, 1]} : vector<8x96xf32> to vector<8x8xf32>
    %41 = vector.extract_strided_slice %39 {offsets = [0, 8], sizes = [8, 8], strides = [1, 1]} : vector<8x96xf32> to vector<8x8xf32>
    %42 = vector.extract_strided_slice %39 {offsets = [0, 16], sizes = [8, 8], strides = [1, 1]} : vector<8x96xf32> to vector<8x8xf32>
    %43 = vector.extract_strided_slice %39 {offsets = [0, 24], sizes = [8, 8], strides = [1, 1]} : vector<8x96xf32> to vector<8x8xf32>
    %44 = vector.shape_cast %40 : vector<8x8xf32> to vector<1x8x8xf32>
    %45 = vector.shape_cast %41 : vector<8x8xf32> to vector<1x8x8xf32>
    %46 = vector.shape_cast %42 : vector<8x8xf32> to vector<1x8x8xf32>
    %47 = vector.shape_cast %43 : vector<8x8xf32> to vector<1x8x8xf32>
    %48 = tpu.concatenate %44, %45, %46, %47 in 0 : vector<1x8x8xf32>, vector<1x8x8xf32>, vector<1x8x8xf32>, vector<1x8x8xf32> -> vector<4x8x8xf32>
    %49 = arith.truncf %48 : vector<4x8x8xf32> to vector<4x8x8xbf16>
    %50 = vector.extract_strided_slice %39 {offsets = [0, 32], sizes = [8, 8], strides = [1, 1]} : vector<8x96xf32> to vector<8x8xf32>
    %51 = vector.extract_strided_slice %39 {offsets = [0, 40], sizes = [8, 8], strides = [1, 1]} : vector<8x96xf32> to vector<8x8xf32>
    %52 = vector.extract_strided_slice %39 {offsets = [0, 48], sizes = [8, 8], strides = [1, 1]} : vector<8x96xf32> to vector<8x8xf32>
    %53 = vector.extract_strided_slice %39 {offsets = [0, 56], sizes = [8, 8], strides = [1, 1]} : vector<8x96xf32> to vector<8x8xf32>
    %54 = vector.shape_cast %50 : vector<8x8xf32> to vector<1x8x8xf32>
    %55 = vector.shape_cast %51 : vector<8x8xf32> to vector<1x8x8xf32>
    %56 = vector.shape_cast %52 : vector<8x8xf32> to vector<1x8x8xf32>
    %57 = vector.shape_cast %53 : vector<8x8xf32> to vector<1x8x8xf32>
    %58 = tpu.concatenate %54, %55, %56, %57 in 0 : vector<1x8x8xf32>, vector<1x8x8xf32>, vector<1x8x8xf32>, vector<1x8x8xf32> -> vector<4x8x8xf32>
    %59 = arith.truncf %58 : vector<4x8x8xf32> to vector<4x8x8xbf16>
    %60 = vector.extract_strided_slice %39 {offsets = [0, 64], sizes = [8, 8], strides = [1, 1]} : vector<8x96xf32> to vector<8x8xf32>
    %61 = vector.extract_strided_slice %39 {offsets = [0, 72], sizes = [8, 8], strides = [1, 1]} : vector<8x96xf32> to vector<8x8xf32>
    %62 = vector.extract_strided_slice %39 {offsets = [0, 80], sizes = [8, 8], strides = [1, 1]} : vector<8x96xf32> to vector<8x8xf32>
    %63 = vector.extract_strided_slice %39 {offsets = [0, 88], sizes = [8, 8], strides = [1, 1]} : vector<8x96xf32> to vector<8x8xf32>
    %64 = vector.shape_cast %60 : vector<8x8xf32> to vector<1x8x8xf32>
    %65 = vector.shape_cast %61 : vector<8x8xf32> to vector<1x8x8xf32>
    %66 = vector.shape_cast %62 : vector<8x8xf32> to vector<1x8x8xf32>
    %67 = vector.shape_cast %63 : vector<8x8xf32> to vector<1x8x8xf32>
    %68 = tpu.concatenate %64, %65, %66, %67 in 0 : vector<1x8x8xf32>, vector<1x8x8xf32>, vector<1x8x8xf32>, vector<1x8x8xf32> -> vector<4x8x8xf32>
    %69 = arith.truncf %68 : vector<4x8x8xf32> to vector<4x8x8xbf16>
    "tpu.trace_start"() <{level = 10 : i32, message = "hqd,hkd->hqk"}> : () -> ()
    %cst_16 = arith.constant dense<0.000000e+00> : vector<4x8x8xf32>
    %70 = tpu.matmul %49, %59, %cst_16 {dimension_numbers = #tpu.dot_dimension_numbers<[2], [2], [1], [1], [0, 0, 0, 1, 1, 1], [0], [0]>} : vector<4x8x8xbf16>, vector<4x8x8xbf16>, vector<4x8x8xf32> -> vector<4x8x8xf32>
    "tpu.trace_stop"() : () -> ()
    %cst_17 = arith.constant 0.353553385 : f32
    %71 = vector.broadcast %cst_17 : f32 to vector<4x8x8xf32>
    %72 = arith.mulf %70, %71 : vector<4x8x8xf32>
    %cst_18 = arith.constant dense<0xFF800000> : vector<4x8xf32>
    %73 = vector.multi_reduction <maximumf>, %72, %cst_18 [2] : vector<4x8x8xf32> to vector<4x8xf32>
    %74 = vector.shape_cast %73 : vector<4x8xf32> to vector<4x8x1xf32>
    %75 = vector.broadcast %74 : vector<4x8x1xf32> to vector<4x8x8xf32>
    %76 = arith.subf %72, %75 : vector<4x8x8xf32>
    %77 = math.exp %76 : vector<4x8x8xf32>
    %cst_19 = arith.constant dense<0.000000e+00> : vector<4x8xf32>
    %78 = vector.multi_reduction <add>, %77, %cst_19 [2] : vector<4x8x8xf32> to vector<4x8xf32>
    %79 = vector.shape_cast %78 : vector<4x8xf32> to vector<4x8x1xf32>
    %80 = tpu.reciprocal %79 : vector<4x8x1xf32> -> vector<4x8x1xf32>
    %81 = vector.broadcast %80 : vector<4x8x1xf32> to vector<4x8x8xf32>
    %82 = arith.mulf %77, %81 : vector<4x8x8xf32>
    %83 = arith.truncf %82 : vector<4x8x8xf32> to vector<4x8x8xbf16>
    "tpu.trace_start"() <{level = 10 : i32, message = "hqk,hkd->hqd"}> : () -> ()
    %cst_20 = arith.constant dense<0.000000e+00> : vector<4x8x8xf32>
    %84 = tpu.matmul %83, %69, %cst_20 {dimension_numbers = #tpu.dot_dimension_numbers<[2], [1], [1], [2], [0, 0, 0, 1, 1, 2], [0], [0]>} : vector<4x8x8xbf16>, vector<4x8x8xbf16>, vector<4x8x8xf32> -> vector<4x8x8xf32>
    "tpu.trace_stop"() : () -> ()
    %85 = vector.extract_strided_slice %84 {offsets = [0, 0, 0], sizes = [1, 8, 8], strides = [1, 1, 1]} : vector<4x8x8xf32> to vector<1x8x8xf32>
    %86 = vector.shape_cast %85 : vector<1x8x8xf32> to vector<8x8xf32>
    %87 = vector.extract_strided_slice %84 {offsets = [1, 0, 0], sizes = [1, 8, 8], strides = [1, 1, 1]} : vector<4x8x8xf32> to vector<1x8x8xf32>
    %88 = vector.shape_cast %87 : vector<1x8x8xf32> to vector<8x8xf32>
    %89 = vector.extract_strided_slice %84 {offsets = [2, 0, 0], sizes = [1, 8, 8], strides = [1, 1, 1]} : vector<4x8x8xf32> to vector<1x8x8xf32>
    %90 = vector.shape_cast %89 : vector<1x8x8xf32> to vector<8x8xf32>
    %91 = vector.extract_strided_slice %84 {offsets = [3, 0, 0], sizes = [1, 8, 8], strides = [1, 1, 1]} : vector<4x8x8xf32> to vector<1x8x8xf32>
    %92 = vector.shape_cast %91 : vector<1x8x8xf32> to vector<8x8xf32>
    %93 = tpu.concatenate %86, %88, %90, %92 in 1 : vector<8x8xf32>, vector<8x8xf32>, vector<8x8xf32>, vector<8x8xf32> -> vector<8x32xf32>
    %94 = arith.truncf %93 : vector<8x32xf32> to vector<8x32xbf16>
    %c0_21 = arith.constant 0 : index
    %c0_22 = arith.constant 0 : index
    %c0_23 = arith.constant 0 : index
    %95 = vector.load %arg6[%c0_21, %c0_22, %c0_23] : memref<1x32x32xbf16, #tpu.memory_space<vmem>>, vector<1x32x32xbf16>
    %96 = vector.shape_cast %95 : vector<1x32x32xbf16> to vector<32x32xbf16>
    %cst_24 = arith.constant dense<0.000000e+00> : vector<8x32xf32>
    %97 = tpu.matmul %94, %96, %cst_24 {dimension_numbers = #tpu.dot_dimension_numbers<[1], [0], [0], [1], [0, 0, 1, 1], [], []>} : vector<8x32xbf16>, vector<32x32xbf16>, vector<8x32xf32> -> vector<8x32xf32>
    %98 = arith.addf %3, %97 : vector<8x32xf32>
    %99 = vector.broadcast %8 : vector<1x32xf32> to vector<8x32xf32>
    %100 = arith.addf %98, %99 : vector<8x32xf32>
    %cst_25 = arith.constant dense<0.000000e+00> : vector<8xf32>
    %101 = vector.multi_reduction <add>, %100, %cst_25 [1] : vector<8x32xf32> to vector<8xf32>
    %102 = vector.shape_cast %101 : vector<8xf32> to vector<8x1xf32>
    %cst_26 = arith.constant 3.200000e+01 : f32
    %103 = vector.broadcast %cst_26 : f32 to vector<8x1xf32>
    %104 = arith.divf %102, %103 : vector<8x1xf32>
    %105 = vector.broadcast %104 : vector<8x1xf32> to vector<8x32xf32>
    %106 = arith.subf %100, %105 : vector<8x32xf32>
    %107 = arith.mulf %106, %106 : vector<8x32xf32>
    %cst_27 = arith.constant dense<0.000000e+00> : vector<8xf32>
    %108 = vector.multi_reduction <add>, %107, %cst_27 [1] : vector<8x32xf32> to vector<8xf32>
    %109 = vector.shape_cast %108 : vector<8xf32> to vector<8x1xf32>
    %cst_28 = arith.constant 3.200000e+01 : f32
    %110 = vector.broadcast %cst_28 : f32 to vector<8x1xf32>
    %111 = arith.divf %109, %110 : vector<8x1xf32>
    %112 = vector.broadcast %104 : vector<8x1xf32> to vector<8x32xf32>
    %113 = arith.subf %100, %112 : vector<8x32xf32>
    %cst_29 = arith.constant 9.99999974E-6 : f32
    %114 = vector.broadcast %cst_29 : f32 to vector<8x1xf32>
    %115 = arith.addf %111, %114 : vector<8x1xf32>
    %116 = math.rsqrt %115 : vector<8x1xf32>
    %117 = vector.broadcast %116 : vector<8x1xf32> to vector<8x32xf32>
    %118 = arith.mulf %113, %117 : vector<8x32xf32>
    %119 = vector.broadcast %9 : vector<1x32xf32> to vector<8x32xf32>
    %120 = arith.mulf %118, %119 : vector<8x32xf32>
    %121 = vector.broadcast %10 : vector<1x32xf32> to vector<8x32xf32>
    %122 = arith.addf %120, %121 : vector<8x32xf32>
    %123 = arith.truncf %122 : vector<8x32xf32> to vector<8x32xbf16>
    %c0_30 = arith.constant 0 : index
    %c0_31 = arith.constant 0 : index
    %c0_32 = arith.constant 0 : index
    %124 = vector.load %arg7[%c0_30, %c0_31, %c0_32] : memref<1x32x64xbf16, #tpu.memory_space<vmem>>, vector<1x32x64xbf16>
    %125 = vector.shape_cast %124 : vector<1x32x64xbf16> to vector<32x64xbf16>
    %cst_33 = arith.constant dense<0.000000e+00> : vector<8x64xf32>
    %126 = tpu.matmul %123, %125, %cst_33 {dimension_numbers = #tpu.dot_dimension_numbers<[1], [0], [0], [1], [0, 0, 1, 1], [], []>} : vector<8x32xbf16>, vector<32x64xbf16>, vector<8x64xf32> -> vector<8x64xf32>
    %127 = vector.broadcast %13 : vector<1x64xf32> to vector<8x64xf32>
    %128 = arith.addf %126, %127 : vector<8x64xf32>
    %cst_34 = arith.constant 5.000000e-01 : f32
    %129 = vector.broadcast %cst_34 : f32 to vector<8x64xf32>
    %130 = arith.mulf %129, %128 : vector<8x64xf32>
    %cst_35 = arith.constant 0.707106769 : f32
    %131 = vector.broadcast %cst_35 : f32 to vector<8x64xf32>
    %132 = arith.mulf %128, %131 : vector<8x64xf32>
    %cst_36 = arith.constant 0.000000e+00 : f32
    %133 = vector.broadcast %cst_36 : f32 to vector<8x64xf32>
    %134 = arith.cmpf oge, %132, %133 : vector<8x64xf32>
    %cst_37 = arith.constant 1.000000e+00 : f32
    %cst_38 = arith.constant -1.000000e+00 : f32
    %135 = vector.broadcast %cst_37 : f32 to vector<8x64xf32>
    %136 = vector.broadcast %cst_38 : f32 to vector<8x64xf32>
    %137 = arith.select %134, %135, %136 : vector<8x64xi1>, vector<8x64xf32>
    %138 = math.absf %132 : vector<8x64xf32>
    %cst_39 = arith.constant 0.327591091 : f32
    %139 = vector.broadcast %cst_39 : f32 to vector<8x64xf32>
    %140 = arith.mulf %139, %138 : vector<8x64xf32>
    %cst_40 = arith.constant 1.000000e+00 : f32
    %141 = vector.broadcast %cst_40 : f32 to vector<8x64xf32>
    %142 = arith.addf %141, %140 : vector<8x64xf32>
    %cst_41 = arith.constant 1.000000e+00 : f32
    %143 = vector.broadcast %cst_41 : f32 to vector<8x64xf32>
    %144 = arith.divf %143, %142 : vector<8x64xf32>
    %cst_42 = arith.constant 1.06140542 : f32
    %145 = vector.broadcast %cst_42 : f32 to vector<8x64xf32>
    %146 = arith.mulf %144, %145 : vector<8x64xf32>
    %cst_43 = arith.constant -1.45315206 : f32
    %147 = vector.broadcast %cst_43 : f32 to vector<8x64xf32>
    %148 = arith.addf %147, %146 : vector<8x64xf32>
    %149 = arith.mulf %144, %148 : vector<8x64xf32>
    %cst_44 = arith.constant 1.42141378 : f32
    %150 = vector.broadcast %cst_44 : f32 to vector<8x64xf32>
    %151 = arith.addf %150, %149 : vector<8x64xf32>
    %152 = arith.mulf %144, %151 : vector<8x64xf32>
    %cst_45 = arith.constant -0.284496725 : f32
    %153 = vector.broadcast %cst_45 : f32 to vector<8x64xf32>
    %154 = arith.addf %153, %152 : vector<8x64xf32>
    %155 = arith.mulf %144, %154 : vector<8x64xf32>
    %cst_46 = arith.constant 0.254829586 : f32
    %156 = vector.broadcast %cst_46 : f32 to vector<8x64xf32>
    %157 = arith.addf %156, %155 : vector<8x64xf32>
    %158 = arith.mulf %144, %157 : vector<8x64xf32>
    %cst_47 = arith.constant 0.000000e+00 : f32
    %159 = vector.broadcast %cst_47 : f32 to vector<8x64xf32>
    %160 = arith.subf %159, %138 : vector<8x64xf32>
    %161 = arith.mulf %160, %138 : vector<8x64xf32>
    %162 = math.exp %161 : vector<8x64xf32>
    %163 = arith.mulf %158, %162 : vector<8x64xf32>
    %cst_48 = arith.constant 1.000000e+00 : f32
    %164 = vector.broadcast %cst_48 : f32 to vector<8x64xf32>
    %165 = arith.subf %164, %163 : vector<8x64xf32>
    %166 = arith.mulf %137, %165 : vector<8x64xf32>
    %cst_49 = arith.constant 1.000000e+00 : f32
    %167 = vector.broadcast %cst_49 : f32 to vector<8x64xf32>
    %168 = arith.addf %167, %166 : vector<8x64xf32>
    %169 = arith.mulf %130, %168 : vector<8x64xf32>
    %170 = arith.truncf %169 : vector<8x64xf32> to vector<8x64xbf16>
    %c0_50 = arith.constant 0 : index
    %c0_51 = arith.constant 0 : index
    %c0_52 = arith.constant 0 : index
    %171 = vector.load %arg8[%c0_50, %c0_51, %c0_52] : memref<1x64x32xbf16, #tpu.memory_space<vmem>>, vector<1x64x32xbf16>
    %172 = vector.shape_cast %171 : vector<1x64x32xbf16> to vector<64x32xbf16>
    %cst_53 = arith.constant dense<0.000000e+00> : vector<8x32xf32>
    %173 = tpu.matmul %170, %172, %cst_53 {dimension_numbers = #tpu.dot_dimension_numbers<[1], [0], [0], [1], [0, 0, 1, 1], [], []>} : vector<8x64xbf16>, vector<64x32xbf16>, vector<8x32xf32> -> vector<8x32xf32>
    %174 = vector.broadcast %11 : vector<1x32xf32> to vector<8x32xf32>
    %175 = arith.addf %173, %174 : vector<8x32xf32>
    %176 = arith.addf %100, %175 : vector<8x32xf32>
    %c0_54 = arith.constant 0 : index
    %c0_55 = arith.constant 0 : index
    %177 = vector.load %arg10[%c0_54, %c0_55] : memref<8x32xf32, #tpu.memory_space<vmem>>, vector<8x32xf32>
    tpu.vector_store %arg10[%c0_54, %c0_55], %176 {strides = array<i32>} : memref<8x32xf32, #tpu.memory_space<vmem>>, vector<8x32xf32>,
    %c1_i32 = arith.constant 1 : i32
    %178 = arith.cmpi eq, %arg1, %c1_i32 : i32
    %179 = arith.extui %178 : i1 to i32
    %c0_i32_56 = arith.constant 0 : i32
    %180 = arith.cmpi ne, %179, %c0_i32_56 : i32
    scf.if %180 {
      %c0_57 = arith.constant 0 : index
      %c0_58 = arith.constant 0 : index
      %c0_59 = arith.constant 0 : index
      %181 = vector.load %arg9[%c0_57, %c0_58, %c0_59] : memref<1x8x32xf32, #tpu.memory_space<vmem>>, vector<1x8x32xf32>
      %182 = vector.shape_cast %181 : vector<1x8x32xf32> to vector<8x32xf32>
      %183 = vector.shape_cast %176 : vector<8x32xf32> to vector<1x8x32xf32>
      tpu.vector_store %arg9[%c0_57, %c0_58, %c0_59], %183 {strides = array<i32>} : memref<1x8x32xf32, #tpu.memory_space<vmem>>, vector<1x8x32xf32>,
    } else {
    }
    return
  }
  func.func @transform_0(%arg0: i32, %arg1: i32) -> (i32, i32, i32) {
    %c0_i32 = arith.constant 0 : i32
    %c0_i32_0 = arith.constant 0 : i32
    %c0_i32_1 = arith.constant 0 : i32
    return %arg0, %c0_i32, %c0_i32_0 : i32, i32, i32
  }
  func.func @transform_1(%arg0: i32, %arg1: i32) -> (i32, i32, i32) {
    %c0_i32 = arith.constant 0 : i32
    %c0_i32_0 = arith.constant 0 : i32
    %c0_i32_1 = arith.constant 0 : i32
    return %arg1, %c0_i32, %c0_i32_0 : i32, i32, i32
  }
  func.func @transform_2(%arg0: i32, %arg1: i32) -> (i32, i32, i32) {
    %c0_i32 = arith.constant 0 : i32
    %c0_i32_0 = arith.constant 0 : i32
    %c0_i32_1 = arith.constant 0 : i32
    return %arg1, %c0_i32, %c0_i32_0 : i32, i32, i32
  }
  func.func @transform_3(%arg0: i32, %arg1: i32) -> (i32, i32, i32) {
    %c0_i32 = arith.constant 0 : i32
    %c0_i32_0 = arith.constant 0 : i32
    %c0_i32_1 = arith.constant 0 : i32
    return %arg1, %c0_i32, %c0_i32_0 : i32, i32, i32
  }
  func.func @transform_4(%arg0: i32, %arg1: i32) -> (i32, i32, i32) {
    %c0_i32 = arith.constant 0 : i32
    %c0_i32_0 = arith.constant 0 : i32
    %c0_i32_1 = arith.constant 0 : i32
    return %arg1, %c0_i32, %c0_i32_0 : i32, i32, i32
  }
  func.func @transform_5(%arg0: i32, %arg1: i32) -> (i32, i32, i32) {
    %c0_i32 = arith.constant 0 : i32
    %c0_i32_0 = arith.constant 0 : i32
    %c0_i32_1 = arith.constant 0 : i32
    return %arg1, %c0_i32, %c0_i32_0 : i32, i32, i32
  }
  func.func @transform_6(%arg0: i32, %arg1: i32) -> (i32, i32, i32) {
    %c0_i32 = arith.constant 0 : i32
    %c0_i32_0 = arith.constant 0 : i32
    %c0_i32_1 = arith.constant 0 : i32
    return %arg1, %c0_i32, %c0_i32_0 : i32, i32, i32
  }
  func.func @transform_7(%arg0: i32, %arg1: i32) -> (i32, i32, i32) {
    %c0_i32 = arith.constant 0 : i32
    %c0_i32_0 = arith.constant 0 : i32
    %c0_i32_1 = arith.constant 0 : i32
    return %arg0, %c0_i32, %c0_i32_0 : i32, i32, i32
  }
}

</mosaic_0001>

<bundles_post_ra>
// kernel: tpu_custom_call.1
= control target key start
LH: loop header
LB: loop body
LE: loop exit
PB: predicated region body
PF: predicated region fallthrough
CT: control target
= control target key end

     0   :  { %s2030_s0 = inlined_call_operand.hbm [shape: f32[2,8,32], index: 0, kind: input, shape index: {}]   ;;  %s2031_s1 = inlined_call_operand.vmem [shape: f32[2,6,32], index: 1, kind: input, shape index: {}]   ;;  %s2032_s2 = inlined_call_operand.hbm [shape: f32[2,1,64], index: 2, kind: input, shape index: {}]   ;;  %s2033_s3 = inlined_call_operand.vmem [shape: bf16[2,32,96], index: 3, kind: input, shape index: {}]   ;;  %s2034_s4 = inlined_call_operand.vmem [shape: bf16[2,32,32], index: 4, kind: input, shape index: {}]   ;;  %s2035_s5 = inlined_call_operand.vmem [shape: bf16[2,32,64], index: 5, kind: input, shape index: {}]   ;;  %s2036_s6 = inlined_call_operand.vmem [shape: bf16[2,64,32], index: 6, kind: input, shape index: {}]   ;;  %s2037_s7 = inlined_call_operand.hbm [shape: f32[2,8,32], index: 7, kind: output, shape index: {}]  }
   0x1   :  { %2048 = sst [smem:[#allocation22_spill]] %s2030_s0 }
   0x2   :  { %2049 = sst [smem:[#allocation23_spill]] %s2031_s1 }
   0x3   :  { %2050 = sst [smem:[#allocation24_spill]] %s2032_s2 }
   0x4   :  { %2051 = sst [smem:[#allocation25_spill]] %s2036_s6 }
   0x5   :  { %2052 = sst [smem:[#allocation26_spill]] %s2037_s7 }
   0x6   :  { %12 = vsyncpa [#allocation4], 0 }
   0x7   :  { %14 = vsyncpa [#allocation4 + $0x1], 0 }
   0x8   :  { %15 = vsyncpa [#allocation7], 0 }
   0x9   :  { %17 = vsyncpa [#allocation7 + $0x1], 0 }
   0xa   :  { %18 = vsyncpa [#allocation5], 0 }
   0xb   :  { %20 = vsyncpa [#allocation5 + $0x1], 0  ;;  %s1679_s24 = smov 0   ;;  %s1681_s25 = smov 0  }
   0xc   :  { %s1683_s26 = smov 0   ;;  %s1685_s27 = smov 0  }
   0xd   :  { %s1687_s28 = smov 0   ;;  %s1689_s29 = smov 0  }
   0xe   :  { %s1691_s30 = smov 0   ;;  %s1693_s8 = smov 0  }
   0xf   :  { %s1695_s9 = smov 0   ;;  %s1697_s10 = smov 0  }
  0x10   :  { %s1699_s11 = smov 0  }
  0x11 LB: > { %2053 = sst [smem:[#allocation12_spill]] %s1599_s27  ;;  %s1207_s12 = sadd.s32 4294967295, %s1627_s11   ;;  %s1627_s11 = sphi %s1699_s11, %s26_s11   ;;  %s1623_s10 = sphi %s1697_s10, %s2087_s10   ;;  %s1619_s9 = sphi %s1695_s9, %s2086_s9   ;;  %s1615_s8 = sphi %s1693_s8, %s2085_s8   ;;  %s1611_s30 = sphi %s1691_s30, %s2084_s30   ;;  %s1607_s29 = sphi %s1689_s29, %s2083_s29   ;;  %s1603_s28 = sphi %s1687_s28, %s2092_s28   ;;  %s1599_s27 = sphi %s1685_s27, %s2091_s27   ;;  %s1595_s26 = sphi %s1683_s26, %s2090_s26   ;;  %s1591_s25 = sphi %s1681_s25, %s2089_s25   ;;  %s1587_s24 = sphi %s1679_s24, %s2088_s24  }
  0x12   : > { %2054 = sst [smem:[#allocation13_spill]] %s1607_s29  ;;  %s1208_s13 = sadd.s32 4294967294, %s1627_s11  }
  0x13   : > { %2055 = sst [smem:[#allocation14_spill]] %s1615_s8  ;;  %p52_p0 = scmp.ne.s32.totalorder %s1607_s29, %s1603_s28 }
  0x14   : > { %2056 = sst [smem:[#allocation15_spill]] %s1619_s9  ;;  %p53_p1 = scmp.eq.s32.totalorder %s1627_s11, 0 }
  0x15   : > { %2057 = sst [smem:[#allocation16_spill]] %s1623_s10  ;;  %p58_p2 = scmp.ne.s32.totalorder %s1603_s28, %s1599_s27 }
  0x16   : > { %p1743_p3 = scmp.eq.s32.totalorder %s1207_s12, 0  ;;  %p1749_p4 = por %p53_p1, %p52_p0 }
  0x17   : > { %p238_p5 = scmp.eq.s32.totalorder %s1207_s12, 3  ;;  %p244_p7 = scmp.eq.s32.totalorder %s1208_s13, 3 }
  0x18   : > { %p1755_p6 = por %p1743_p3, %p58_p2  ;;  %p1314_p10 = scmp.lt.s32.totalorder %s1627_s11, 4 }
  0x19   : > { %p1759_p8 = por %p238_p5, %p52_p0  ;;  %p1763_p9 = por %p244_p7, %p58_p2 }
  0x1a   : > { %s264_s21 = sand.u32 1, %s1607_s29   ;;  %s1212_s22 = sshll.u32 %s1623_s10, 3 }
  0x1b   : > { %s2061_s19 = scalar_select %p1759_p8, 1, 0 }
  0x1c   : > { %s2063_s20 = scalar_select %p1763_p9, 1, 0 }
  0x1d   : > { %2062 = sst [smem:[#allocation17_spill]] %s2061_s19  ;;  %s1211_s23 = sshll.u32 %s264_s21, 3 }
  0x1e   : > { %2064 = sst [smem:[#allocation18_spill]] %s2063_s20  ;;  %s268_s27 = scalar_lea.vmem [#allocation3], %s1211_s23 }
  0x1f   : > { %s2065_s0 = sld [smem:[#allocation22_spill]]  ;;  %s276_s7 = sshll.u32 %s268_s27, 4  ;;  %s277_s7 = int_to_ptr.vmem [resolvable:$true] %s276_s7 }
  0x20   : > { %p1304_p11 = pnand %p1314_p10, %p1749_p4  ;;  %p1213_p12 = scmp.ge.s32.totalorder %s1627_s11, 1 }
  0x21   : > { %p337_p13 = scmp.lt.s32.totalorder %s1627_s11, 5  ;;  %s265_s15 = scalar_lea.sflag [#allocation4], %s264_s21 }
  0x22   : > { %s35_s27 = sadd.s32 1, %s1619_s9  ;;  %s97_s23 = sadd.s32 1, %s1595_s26 }
  0x23   : > { %p1779_p0 = pnand %p1213_p12, %p337_p13  ;;  %p36_p2 = scmp.ge.s32.totalorder %s35_s27, 2 }
  0x24   : > { %p104_p5 = scmp.ne.s32.totalorder %s1595_s26, %s1591_s25  ;;  %p110_p7 = scmp.ne.s32.totalorder %s1591_s25, %s1587_s24 }
  0x25   : > { %s272_s13 = scalar_lea.hbm %s2065_s0, %s1212_s22  ;;  %s2094_s27 = smov (%p36_p2, %s35_s27), 0 }
  0x26   : > { %s274_s14 = sshll.u32 %s272_s13, 4  ;;  %2067 = sst [smem:[#allocation19_spill]] %s2094_s27  ;;  %s275_s14 = int_to_ptr.hbm [resolvable:$true] %s274_s14 }
  0x27   : > { %1306 = dma.hbm_to_vmem [thread:$0]  (!%p1304_p11), %s275_s14, 128, %s277_s7, %s265_s15  }
  0x28   : > { %s2068_s17 = sadd.s32 1, %s1623_s10  ;;  %s94_s7 = ssub.s32 %s1619_s9, %s2094_s27 }
  0x29   : > { %s2096_s17 = smov (!%p36_p2, %s2068_s17), %s1623_s10  ;;  %p1798_p4 = por %p104_p5, %p53_p1 }
  0x2a   : > { %p40_p11 = scmp.ge.s32.totalorder %s2096_s17, 2  ;;  %p95_p12 = scmp.eq.s32.totalorder %s94_s7, 0 }
  0x2b   : > { %p1804_p13 = por %p110_p7, %p1743_p3  ;;  %s290_s21 = sand.u32 1, %s1595_s26  }
  0x2c   : > { %s2098_s17 = smov (%p40_p11, %s2096_s17), 0  ;;  %s2072_s2 = sld [smem:[#allocation24_spill]] }
  0x2d   : > { %2071 = sst [smem:[#allocation20_spill]] %s2098_s17  ;;  %s42_s13 = ssub.s32 %s1623_s10, %s2098_s17 }
  0x2e   : > { %s1812_s12 = scalar_select %p95_p12, %s1595_s26, %s97_s23  }
  0x2f   : > { %p43_p1 = scmp.eq.s32.totalorder %s42_s13, 0  ;;  %s293_s20 = scalar_lea.vmem [#allocation6], %s290_s21 }
  0x30   : > { %s300_s19 = sshll.u32 %s293_s20, 4  ;;  %s2073_s7 = sadd.s32 1, %s1607_s29  ;;  %s301_s19 = int_to_ptr.vmem [resolvable:$true] %s300_s19 }
  0x31   : > { %s1823_s16 = scalar_select %p43_p1, %s1607_s29, %s2073_s7  }
  0x32   : > { %s296_s27 = scalar_lea.hbm %s2072_s2, %s1619_s9  ;;  %p1307_p3 = pnand %p1314_p10, %p1798_p4 }
  0x33   : > { %2074 = sst [smem:[#allocation21_spill]] %s1823_s16  ;;  %s298_s8 = sshll.u32 %s296_s27, 4  ;;  %s299_s8 = int_to_ptr.hbm [resolvable:$true] %s298_s8 }
  0x34   : > { %s291_s6 = scalar_lea.sflag [#allocation7], %s290_s21  ;;  %341 = sbr.rel (%p1779_p0) target bundleno = 2111 (0x83f), region = 48 }
  0x35   : > { %1309 = dma.hbm_to_vmem [thread:$0]  (!%p1307_p3), %s299_s8, 16, %s301_s19, %s291_s6  }
  0x36   : > { %s1832_s0 = sand.u32 (!%p1779_p0), 1, %s1603_s28  }
  0x37   : > { %s1214_s20 = sshll.u32 (!%p1779_p0), %s1832_s0, 3  ;;  %s344_s23 = scalar_lea.sflag (!%p1779_p0), [#allocation4], %s1832_s0 }
  0x38   : > { %s347_s13 = scalar_lea.vmem (!%p1779_p0), [#allocation3], %s1214_s20 }
  0x39   : > { %1574 = dma.done.wait (%p1755_p6), %s344_s23, 128  }
  0x3a   : > { %1576 = vsyncadd (%p1755_p6), %s344_s23, 4294967168  ;;  %s353_s6 = sand.u32 1, %s1591_s25  }
  0x3b   : > { %s354_s8 = scalar_lea.sflag [#allocation7], %s353_s6  ;;  %s1841_s19 = scalar_lea.vmem [#allocation6], %s353_s6 }
  0x3c   : > { %1578 = dma.done.wait (%p1804_p13), %s354_s8, 16  }
  0x3d   : > { %1580 = vsyncadd (%p1804_p13), %s354_s8, 4294967280  ;;  %p416_p10 = scmp.lt.s32.totalorder %s1611_s30, 1  ;;  %s2075_s1 = sld [smem:[#allocation23_spill]] }
  0x3e   : > { %p1225_p6 = scmp.ne.s32.totalorder %s1611_s30, 0 }
  0x3f   : > { %s417_s22 = scalar_select %p416_p10, %s1611_s30, 1 }
  0x41   : > { %s1216_s27 = sshll.u32 %s417_s22, 3  ;;  %s1283_s14 = sshll.u32 %s417_s22, 4 }
  0x42   : > { %s1857_s6 = scalar_lea.vmem %s2033_s3, %s1283_s14  ;;  %s1862_s24 = scalar_lea.vmem %s2034_s4, %s1283_s14 }
  0x43   : > { %s1852_s15 = scalar_lea.vmem %s2075_s1, %s1216_s27  ;;  %s1867_s9 = scalar_lea.vmem %s2035_s5, %s1283_s14 }
  0x44   : > { %s1286_s16 = sshll.u32 %s417_s22, 5  ;;  %s2076_s27 = sld [smem:[#allocation25_spill]] }
  0x45   : > { %s1874_s1 = scalar_lea.vmem [#allocation8], %s1214_s20 }
  0x46   : > { %444 = sbr.rel (%p1225_p6) target bundleno = 77 (0x4d), region = 60 }
  0x4a   : > { %s1872_s18 = scalar_lea.vmem %s2076_s27, %s1286_s16 }
  0x4b   : > { %v445_v0 = vld [vmem:[%s347_s13] sm:$0xff]  ;;  %vm446_vm0 = vcmask 261120  }
  0x4c   : > { %447 = vst.msk [vmem:[#allocation2] sm:$0xff] %vm446_vm0, %v445_v0 }
  0x4d PF: > { %vm451_vm1 = vcmask 261120   ;;  %v1629_v3 = vmov 32.0   ;;  %v1288_v15 = vld [vmem:[%s1857_s6 + $0x8] sm:$0xff]  ;;  %v1287_v16 = vld [vmem:[%s1857_s6] sm:$0xff]  ;;  %s1630_s2 = smov 104   ;;  %s1631_s29 = smov 120  }
  0x4e   : > { %1415 = vrcp.f32 %v1629_v3  ;;  %511 = vmatpush.bf16.msra.mxu0 %v1288_v15  ;;  %v1890_v25 = vld [vmem:[%s1852_s15] sm:$0x3f]  ;;  %s1632_s10 = smov 112   ;;  %s1633_s17 = smov 96   ;;  %vm537_vm6 = vcmask 64512   ;;  %vm738_vm7 = vcmask 1043456  }
  0x4f   : > { %v481_v27 = vperm.slane %v1890_v25, 0  ;;  %v483_v30 = vperm.slane %v1890_v25, 1  ;;  %s1634_s16 = smov 64   ;;  %s1635_s20 = smov 8  }
  0x50   : > { %s1636_s13 = smov 24   ;;  %s1637_s22 = smov 16  }
  0x51   : > { %p1278_p0 = scmp.ne.s32.totalorder %s1611_s30, 1 }
  0x52   : > { %512 = vmatpush.bf16.msra.mxu0 %v1287_v16 }
  0x53   : > { %v1877_v1 = vld [vmem:[#allocation2] sm:$0xff] }
  0x54   : > { %v452_v2 = vsel %vm451_vm1, %v1877_v1, 0.0  ;;  %v1416_v4 = vpop.eup %1415 }
  0x55   : > { %453 = vadd.xlane.f32.xlu0 %v452_v2  ;;  %v456_v5 = vmul.f32 32.0, %v1416_v4  ;;  %vm460_vm2 = vweird.f32 %v1416_v4 }
  0x57   : > { %v457_v6 = vsub.f32 1.0, %v456_v5 }
  0x59   : > { %v458_v7 = vmul.f32 %v1416_v4, %v457_v6 }
  0x5b   : > { %v459_v8 = vadd.f32 %v1416_v4, %v458_v7 }
  0x5d   : > { %v1881_v9 = vsel %vm460_vm2, %v1416_v4, %v459_v8 }
  0xc8   : > { %v454_v10 = vpop.xlane.xlu0 %453 }
  0xc9   : > { %v462_v11 = vmul.f32 %v1881_v9, %v454_v10 }
  0xcb   : > { %v463_v12 = vsub.f32 %v1877_v1, %v462_v11 }
  0xcd   : > { %v464_v13 = vmul.f32 %v463_v12, %v463_v12 }
  0xcf   : > { %v465_v14 = vsel %vm451_vm1, %v464_v13, 0.0 }
  0xd0   : > { %466 = vadd.xlane.f32.xlu0 %v465_v14 }
 0x143   : > { %v467_v17 = vpop.xlane.xlu0 %466 }
 0x144   : > { %v468_v18 = vmul.f32 %v467_v17, %v1881_v9 }
 0x146   : > { %v469_v19 = vadd.f32 1e-05, %v468_v18 }
 0x148   : > { %1417 = vrsqrt.f32 %v469_v19  ;;  %vm476_vm4 = vweird.f32 %v469_v19 }
 0x14e   : > { %v1418_v20 = vpop.eup %1417 }
 0x14f   : > { %v471_v21 = vmul.f32 %v1418_v20, %v469_v19  ;;  %vm477_vm3 = vweird.f32 %v1418_v20 }
 0x150   : > { %vm478_vm5 = vmor %vm476_vm4, %vm477_vm3 }
 0x151   : > { %v472_v22 = vmul.f32 %v1418_v20, %v471_v21 }
 0x153   : > { %v473_v23 = vmul.f32 0.5, %v472_v22 }
 0x155   : > { %v474_v24 = vsub.f32 1.5, %v473_v23 }
 0x157   : > { %v475_v26 = vmul.f32 %v1418_v20, %v474_v24 }
 0x159   : > { %v479_v28 = vsel %vm478_vm5, %v1418_v20, %v475_v26 }
 0x15a   : > { %v480_v29 = vmul.f32 %v479_v28, %v463_v12 }
 0x15c   : > { %v482_v31 = vmul.f32 %v481_v27, %v480_v29 }
 0x15e   : > { %v484_v32 = vadd.f32 %v483_v30, %v482_v31 }
 0x160   : > { %v485_v33 = vpack.c.bf16 %v484_v32, %v484_v32 }
 0x162   : > { %1234 = vmatmul.msk.bf16.vlgmr.msra.gmra.mxu0 %vm451_vm1, %v485_v33 }
 0x1df   : > { %v514_v34 = vpop.f32.mrf.mxu0 }
 0x1e0   : > { %525 = vrot.lane.b32.xlu2 %v514_v34, %s1630_s2  ;;  %519 = vrot.lane.b32.xlu1 %v514_v34, %s1631_s29  ;;  %v528_v43 = vpack.c.bf16 %v514_v34, %v514_v34 }
 0x1e2   : > { %v533_v47 = vunpack.c.l.b16 %v528_v43 }
 0x1e4   : > { %v1900_v50 = vpack.c.b16 %v533_v47, %v533_v47 }
 0x1e7   : > { %v516_v35 = vpop.f32.mrf.mxu0 }
 0x1e8   : > { %522 = vrot.lane.b32.xlu1 %v514_v34, %s1632_s10 }
 0x23a   : > { %v526_v36 = vpop.permute.xlu2 %525 }
 0x23b   : > { %v531_v37 = vpack.c.bf16 %v526_v36, %v526_v36 }
 0x23d   : > { %v606_v38 = vunpack.c.l.b16 %v531_v37 }
 0x23f   : > { %v1895_v39 = vpack.c.b16 %v606_v38, %v606_v38 }
 0x241   : > { %608 = vrot.lane.b32.xlu1 %v1895_v39, %s1633_s17 }
 0x252   : > { %v520_v40 = vpop.permute.xlu1 %519 }
 0x253   : > { %v529_v41 = vpack.c.bf16 %v520_v40, %v520_v40 }
 0x255   : > { %v558_v42 = vunpack.c.l.b16 %v529_v41 }
 0x257   : > { %v559_v44 = vpack.c.b16 %v558_v42, %v558_v42 }
 0x259   : > { %560 = vrot.lane.b32.xlu2 %v559_v44, %s1633_s17 }
 0x25a   : > { %v523_v45 = vpop.permute.xlu1 %522 }
 0x25b   : > { %v530_v46 = vpack.c.bf16 %v523_v45, %v523_v45 }
 0x25d   : > { %v582_v48 = vunpack.c.l.b16 %v530_v46 }
 0x25f   : > { %v1898_v49 = vpack.c.b16 %v582_v48, %v582_v48 }
 0x261   : > { %584 = vrot.lane.b32.xlu0 %v1898_v49, %s1633_s17  ;;  %535 = vrot.lane.b32.xlu2 %v1900_v50, %s1633_s17 }
 0x2b3   : > { %v561_v51 = vpop.permute.xlu2 %560  ;;  %v609_v52 = vpop.permute.xlu1 %608 }
 0x2b4   : > { %v566_v53 = vsel %vm537_vm6, %v561_v51, 0  ;;  %v614_v54 = vsel %vm537_vm6, %v609_v52, 0 }
 0x2b5   : > { %575 = vmatpush.bf16.xpose.msra.mxu2 %v566_v53  ;;  %623 = vmatpush.bf16.xpose.msrb.mxu0 %v614_v54 }
 0x2bb   : > { %v536_v55 = vpop.permute.xlu2 %535 }
 0x2bc   : > { %1236 = vmatmul.msk.bf16.vlgmr.msra.gmra.mxu2 %vm537_vm6, %v529_v41  ;;  %1238 = vmatmul.msk.bf16.vlgmr.msrb.gmra.mxu0 %vm537_vm6, %v531_v37  ;;  %v542_v56 = vsel %vm537_vm6, %v536_v55, 0 }
 0x2bd   : > { %551 = vmatpush.bf16.xpose.msra.mxu1 %v542_v56 }
 0x2c4   : > { %1235 = vmatmul.msk.bf16.vlgmr.msra.gmra.mxu1 %vm537_vm6, %v528_v43 }
 0x2d3   : > { %v585_v57 = vpop.permute.xlu0 %584 }
 0x2d4   : > { %v590_v58 = vsel %vm537_vm6, %v585_v57, 0 }
 0x2d5   : > { %599 = vmatpush.bf16.xpose.msra.mxu3 %v590_v58 }
 0x2dc   : > { %1237 = vmatmul.msk.bf16.vlgmr.msra.gmra.mxu3 %vm537_vm6, %v530_v46 }
 0x339   : > { %v625_v59 = vpop.f32.mrf.mxu0 }
 0x33a   : > { %v632_v60 = vmul.f32 0.35355338, %v625_v59 }
 0x33c   : > { %v642_v61 = vsel %vm537_vm6, %v632_v60, -inf }
 0x33d   : > { %643 = vmax.xlane.f32.xlu0 %v642_v61 }
 0x33f   : > { %v577_v62 = vpop.f32.mrf.mxu2 }
 0x340   : > { %v630_v63 = vmul.f32 0.35355338, %v577_v62 }
 0x341   : > { %v553_v0 = vpop.f32.mrf.mxu1  ;;  %v627_v2 = vpop.f32.mrf.mxu0 }
 0x342   : > { %v636_v3 = vsel %vm537_vm6, %v630_v63, -inf  ;;  %v629_v10 = vmul.f32 0.35355338, %v553_v0 }
 0x343   : > { %637 = vmax.xlane.f32.xlu1 %v636_v3 }
 0x344   : > { %v633_v12 = vsel %vm537_vm6, %v629_v10, -inf }
 0x347   : > { %v579_v4 = vpop.f32.mrf.mxu2 }
 0x349   : > { %v555_v5 = vpop.f32.mrf.mxu1 }
 0x351   : > { %755 = vrot.lane.b32.xlu0 %v559_v44, %s1634_s16 }
 0x35f   : > { %v601_v6 = vpop.f32.mrf.mxu3 }
 0x360   : > { %v631_v7 = vmul.f32 0.35355338, %v601_v6 }
 0x362   : > { %v639_v8 = vsel %vm537_vm6, %v631_v7, -inf }
 0x363   : > { %640 = vmax.xlane.f32.xlu2 %v639_v8 }
 0x367   : > { %v603_v11 = vpop.f32.mrf.mxu3 }
 0x36b   : > { %634 = vmax.xlane.f32.xlu2 %v633_v12 }
 0x3b0   : > { %v644_v13 = vpop.xlane.xlu0 %643 }
 0x3b1   : > { %v648_v14 = vsub.f32 %v632_v60, %v644_v13 }
 0x3b3   : > { %v655_v15 = vmul.f32 1.442695, %v648_v14 }
 0x3b5   : > { %1419 = vpow2.f32 %v655_v15 }
 0x3b6   : > { %v638_v16 = vpop.xlane.xlu1 %637 }
 0x3b7   : > { %v646_v17 = vsub.f32 %v630_v63, %v638_v16 }
 0x3b9   : > { %v651_v18 = vmul.f32 1.442695, %v646_v17 }
 0x3bb   : > { %v1917_v19 = vpop.eup %1419  ;;  %1421 = vpow2.f32 %v651_v18 }
 0x3bc   : > { %v666_v20 = vsel %vm537_vm6, %v1917_v19, 0.0 }
 0x3bd   : > { %667 = vadd.xlane.f32.xlu1 %v666_v20 }
 0x3c1   : > { %v1422_v21 = vpop.eup %1421 }
 0x3c2   : > { %v660_v23 = vsel %vm537_vm6, %v1422_v21, 0.0 }
 0x3c3   : > { %v756_v22 = vpop.permute.xlu0 %755 }
 0x3c4   : > { %v761_v24 = vsel %vm738_vm7, %v756_v22, 0 }
 0x3c5   : > { %661 = vadd.xlane.f32.xlu1 %v660_v23  ;;  %770 = vmatpush.bf16.msrb.mxu2 %v761_v24 }
 0x3d6   : > { %v641_v26 = vpop.xlane.xlu2 %640 }
 0x3d7   : > { %v647_v27 = vsub.f32 %v631_v7, %v641_v26 }
 0x3d9   : > { %v653_v28 = vmul.f32 1.442695, %v647_v27 }
 0x3db   : > { %1423 = vpow2.f32 %v653_v28 }
 0x3de   : > { %v635_v29 = vpop.xlane.xlu2 %634  ;;  %797 = vrot.lane.b32.xlu1 %v1895_v39, %s1634_s16 }
 0x3df   : > { %v645_v30 = vsub.f32 %v629_v10, %v635_v29 }
 0x3e1   : > { %v1925_v31 = vpop.eup %1423  ;;  %v649_v32 = vmul.f32 1.442695, %v645_v30 }
 0x3e2   : > { %v663_v33 = vsel %vm537_vm6, %v1925_v31, 0.0 }
 0x3e3   : > { %1425 = vpow2.f32 %v649_v32  ;;  %664 = vadd.xlane.f32.xlu2 %v663_v33 }
 0x3e9   : > { %v1929_v34 = vpop.eup %1425 }
 0x3ea   : > { %v657_v35 = vsel %vm537_vm6, %v1929_v34, 0.0 }
 0x3eb   : > { %658 = vadd.xlane.f32.xlu0 %v657_v35 }
 0x3fb   : > { %776 = vrot.lane.b32.xlu2 %v1898_v49, %s1634_s16 }
 0x403   : > { %733 = vrot.lane.b32.xlu2 %v1900_v50, %s1634_s16 }
 0x430   : > { %v668_v36 = vpop.xlane.xlu1 %667 }
 0x431   : > { %1427 = vrcp.f32 %v668_v36  ;;  %v722_v49 = vand.u32 2147483648, %v668_v36  ;;  %vm716_vm11 = vweird.f32 %v668_v36  ;;  %v720_v50 = vand.u32 2147483647, %v668_v36 }
 0x433   : > { %v723_v56 = vor.u32 1.1754944e-38, %v722_v49  ;;  %vm721_vm15 = vcmp.eq.f32.partialorder %v720_v50, 8.507059e+37 }
 0x437   : > { %v1428_v37 = vpop.eup %1427 }
 0x438   : > { %v662_v38 = vpop.xlane.xlu1 %661  ;;  %v712_v39 = vmul.f32 %v1428_v37, %v668_v36  ;;  %vm717_vm9 = vweird.f32 %v1428_v37 }
 0x439   : > { %1429 = vrcp.f32 %v662_v38  ;;  %v694_v45 = vand.u32 2147483648, %v662_v38  ;;  %v692_v47 = vand.u32 2147483647, %v662_v38  ;;  %vm688_vm10 = vweird.f32 %v662_v38  ;;  %vm718_vm13 = vmor %vm716_vm11, %vm717_vm9 }
 0x43a   : > { %v713_v40 = vsub.f32 1.0, %v712_v39  ;;  %vm833_vm11 = vcmask 195584  }
 0x43b   : > { %v695_v52 = vor.u32 1.1754944e-38, %v694_v45  ;;  %vm693_vm14 = vcmp.eq.f32.partialorder %v692_v47, 8.507059e+37 }
 0x43c   : > { %v714_v43 = vmul.f32 %v1428_v37, %v713_v40 }
 0x43e   : > { %v715_v48 = vadd.f32 %v1428_v37, %v714_v43 }
 0x43f   : > { %v1430_v41 = vpop.eup %1429 }
 0x440   : > { %v684_v42 = vmul.f32 %v1430_v41, %v662_v38  ;;  %vm689_vm8 = vweird.f32 %v1430_v41  ;;  %v719_v54 = vsel %vm718_vm13, %v1428_v37, %v715_v48 }
 0x441   : > { %vm690_vm12 = vmor %vm688_vm10, %vm689_vm8  ;;  %v724_v58 = vsel %vm721_vm15, %v723_v56, %v719_v54 }
 0x442   : > { %v685_v44 = vsub.f32 1.0, %v684_v42  ;;  %v728_v60 = vmul.f32 %v1917_v19, %v724_v58  ;;  %v1289_v42 = vld [vmem:[%s1862_s24] sm:$0xff] }
 0x444   : > { %v686_v46 = vmul.f32 %v1430_v41, %v685_v44  ;;  %v732_v63 = vpack.c.bf16 %v728_v60, %v728_v60 }
 0x446   : > { %v687_v51 = vadd.f32 %v1430_v41, %v686_v46 }
 0x448   : > { %v691_v53 = vsel %vm690_vm12, %v1430_v41, %v687_v51  ;;  %v869_v51 = vperm.slane %v1890_v25, 2 }
 0x449   : > { %v696_v55 = vsel %vm693_vm14, %v695_v52, %v691_v53 }
 0x44a   : > { %v726_v57 = vmul.f32 %v1422_v21, %v696_v55 }
 0x44c   : > { %v730_v59 = vpack.c.bf16 %v726_v57, %v726_v57 }
 0x44e   : > { %1240 = vmatmul.msk.bf16.vlgmr.msrb.gmra.mxu2 %vm537_vm6, %v730_v59 }
 0x450   : > { %v798_v61 = vpop.permute.xlu1 %797 }
 0x451   : > { %v803_v62 = vsel %vm738_vm7, %v798_v61, 0  ;;  %v1292_v61 = vld [vmem:[%s1867_s9 + $0x8] sm:$0xff] }
 0x452   : > { %812 = vmatpush.bf16.msra.mxu0 %v803_v62  ;;  %926 = vmatpush.bf16.msra.mxu2 %v1292_v61  ;;  %v1291_v62 = vld [vmem:[%s1867_s9] sm:$0xff]  ;;  %v982_v61 = vperm.slane %v1890_v25, 5 }
 0x455   : > { %1242 = vmatmul.msk.bf16.vlgmr.msra.gmra.mxu0 %vm537_vm6, %v732_v63 }
 0x456   : > { %v665_v0 = vpop.xlane.xlu2 %664  ;;  %927 = vmatpush.bf16.msra.mxu2 %v1291_v62 }
 0x457   : > { %1431 = vrcp.f32 %v665_v0  ;;  %v708_v8 = vand.u32 2147483648, %v665_v0  ;;  %v706_v11 = vand.u32 2147483647, %v665_v0  ;;  %vm702_vm2 = vweird.f32 %v665_v0 }
 0x459   : > { %v709_v14 = vor.u32 1.1754944e-38, %v708_v8  ;;  %vm707_vm4 = vcmp.eq.f32.partialorder %v706_v11, 8.507059e+37  ;;  %v893_v8 = vperm.slane %v1890_v25, 3 }
 0x45d   : > { %v1432_v2 = vpop.eup %1431 }
 0x45e   : > { %v698_v3 = vmul.f32 %v1432_v2, %v665_v0  ;;  %v777_v4 = vpop.permute.xlu2 %776  ;;  %v659_v5 = vpop.xlane.xlu0 %658  ;;  %vm703_vm0 = vweird.f32 %v1432_v2 }
 0x45f   : > { %1433 = vrcp.f32 %v659_v5  ;;  %v782_v7 = vsel %vm738_vm7, %v777_v4, 0  ;;  %vm704_vm3 = vmor %vm702_vm2, %vm703_vm0  ;;  %v680_v22 = vand.u32 2147483648, %v659_v5  ;;  %v678_v24 = vand.u32 2147483647, %v659_v5 }
 0x460   : > { %v699_v6 = vsub.f32 1.0, %v698_v3  ;;  %791 = vmatpush.bf16.msrb.mxu3 %v782_v7  ;;  %vm674_vm8 = vweird.f32 %v659_v5 }
 0x461   : > { %v681_v28 = vor.u32 1.1754944e-38, %v680_v22  ;;  %vm679_vm10 = vcmp.eq.f32.partialorder %v678_v24, 8.507059e+37  ;;  %v1295_v24 = vld [vmem:[%s1872_s18 + $0x10] sm:$0xff] }
 0x462   : > { %v700_v10 = vmul.f32 %v1432_v2, %v699_v6 }
 0x464   : > { %v701_v12 = vadd.f32 %v1432_v2, %v700_v10 }
 0x465   : > { %v1434_v13 = vpop.eup %1433 }
 0x466   : > { %v670_v15 = vmul.f32 %v1434_v13, %v659_v5  ;;  %v734_v16 = vpop.permute.xlu2 %733  ;;  %v705_v17 = vsel %vm704_vm3, %v1432_v2, %v701_v12  ;;  %vm675_vm5 = vweird.f32 %v1434_v13  ;;  %v895_v12 = vperm.slane %v1890_v25, 4 }
 0x467   : > { %v740_v18 = vsel %vm738_vm7, %v734_v16, 0  ;;  %v710_v19 = vsel %vm707_vm4, %v709_v14, %v705_v17  ;;  %vm676_vm9 = vmor %vm674_vm8, %vm675_vm5  ;;  %vm831_vm7 = vcmask 130048   ;;  %vm1007_vm4 = vcmask 523264  }
 0x468   : > { %v671_v20 = vsub.f32 1.0, %v670_v15  ;;  %749 = vmatpush.bf16.msrb.mxu1 %v740_v18  ;;  %v727_v21 = vmul.f32 %v1925_v31, %v710_v19  ;;  %v1414_v15 = vld [vmem:[%s1841_s19] ss:$0 sm:$0xff] }
 0x46a   : > { %v672_v23 = vmul.f32 %v1434_v13, %v671_v20  ;;  %v731_v26 = vpack.c.bf16 %v727_v21, %v727_v21 }
 0x46c   : > { %v673_v27 = vadd.f32 %v1434_v13, %v672_v23  ;;  %1241 = vmatmul.msk.bf16.vlgmr.msrb.gmra.mxu3 %vm537_vm6, %v731_v26  ;;  %v1296_v23 = vld [vmem:[%s1872_s18 + $0x18] sm:$0xff] }
 0x46d   : > { %1015 = vmatpush.bf16.msra.mxu3 %v1296_v23 }
 0x46e   : > { %v677_v29 = vsel %vm676_vm9, %v1434_v13, %v673_v27 }
 0x46f   : > { %v682_v30 = vsel %vm679_vm10, %v681_v28, %v677_v29  ;;  %v1294_v28 = vld [vmem:[%s1872_s18 + $0x8] sm:$0xff] }
 0x470   : > { %v725_v32 = vmul.f32 %v1929_v34, %v682_v30  ;;  %v1290_v34 = vld [vmem:[%s1862_s24 + $0x8] sm:$0xff] }
 0x471   : > { %861 = vmatpush.bf16.msra.mxu1 %v1290_v34  ;;  %1016 = vmatpush.bf16.msra.mxu3 %v1295_v24 }
 0x472   : > { %v729_v33 = vpack.c.bf16 %v725_v32, %v725_v32 }
 0x474   : > { %1239 = vmatmul.msk.bf16.vlgmr.msrb.gmra.mxu1 %vm537_vm6, %v729_v33 }
 0x475   : > { %862 = vmatpush.bf16.msra.mxu1 %v1289_v42  ;;  %1017 = vmatpush.bf16.msra.mxu3 %v1294_v28 }
 0x4d1   : > { %v772_v31 = vpop.f32.mrf.mxu2 }
 0x4d2   : > { %819 = vrot.lane.b32.xlu1 %v772_v31, %s1635_s20  ;;  %v814_v35 = vpop.f32.mrf.mxu0  ;;  %v1293_v31 = vld [vmem:[%s1872_s18] sm:$0xff] }
 0x4d3   : > { %1018 = vmatpush.bf16.msra.mxu3 %v1293_v31 }
 0x4d9   : > { %v774_v36 = vpop.f32.mrf.mxu2 }
 0x4da   : > { %827 = vrot.lane.b32.xlu1 %v814_v35, %s1636_s13  ;;  %v816_v37 = vpop.f32.mrf.mxu0 }
 0x4ef   : > { %v793_v38 = vpop.f32.mrf.mxu3 }
 0x4f0   : > { %823 = vrot.lane.b32.xlu2 %v793_v38, %s1637_s22 }
 0x4f1   : > { %v751_v39 = vpop.f32.mrf.mxu1 }
 0x4f7   : > { %v795_v40 = vpop.f32.mrf.mxu3 }
 0x4f9   : > { %v753_v41 = vpop.f32.mrf.mxu1 }
 0x544   : > { %v820_v43 = vpop.permute.xlu1 %819 }
 0x545   : > { %v830_v44 = vsel %vm537_vm6, %v751_v39, %v820_v43 }
 0x54a   : > { %v824_v45 = vpop.permute.xlu2 %823 }
 0x54b   : > { %v832_v46 = vsel %vm831_vm7, %v830_v44, %v824_v45 }
 0x54c   : > { %v828_v47 = vpop.permute.xlu1 %827 }
 0x54d   : > { %v834_v48 = vsel %vm833_vm11, %v832_v46, %v828_v47 }
 0x54e   : > { %v835_v49 = vpack.c.bf16 %v834_v48, %v834_v48 }
 0x550   : > { %1251 = vmatmul.msk.bf16.vlgmr.msra.gmra.mxu1 %vm451_vm1, %v835_v49 }
 0x5cd   : > { %v864_v50 = vpop.f32.mrf.mxu1 }
 0x5ce   : > { %v868_v52 = vadd.f32 %v864_v50, %v1877_v1 }
 0x5d0   : > { %v1953_v53 = vadd.f32 %v869_v51, %v868_v52 }
 0x5d2   : > { %v871_v54 = vsel %vm451_vm1, %v1953_v53, 0.0 }
 0x5d3   : > { %872 = vadd.xlane.f32.xlu2 %v871_v54  ;;  %v1638_v54 = vmov -1.0  }
 0x5d5   : > { %v866_v55 = vpop.f32.mrf.mxu1 }
 0x646   : > { %v873_v56 = vpop.xlane.xlu2 %872 }
 0x647   : > { %v874_v57 = vmul.f32 %v873_v56, %v1881_v9 }
 0x649   : > { %v875_v58 = vsub.f32 %v1953_v53, %v874_v57 }
 0x64b   : > { %v876_v59 = vmul.f32 %v875_v58, %v875_v58 }
 0x64d   : > { %v877_v60 = vsel %vm451_vm1, %v876_v59, 0.0 }
 0x64e   : > { %878 = vadd.xlane.f32.xlu1 %v877_v60 }
 0x6c1   : > { %v879_v1 = vpop.xlane.xlu1 %878 }
 0x6c2   : > { %v880_v63 = vmul.f32 %v879_v1, %v1881_v9 }
 0x6c4   : > { %v881_v0 = vadd.f32 1e-05, %v880_v63 }
 0x6c6   : > { %1435 = vrsqrt.f32 %v881_v0  ;;  %vm888_vm12 = vweird.f32 %v881_v0 }
 0x6cc   : > { %v1436_v2 = vpop.eup %1435 }
 0x6cd   : > { %v883_v3 = vmul.f32 %v1436_v2, %v881_v0  ;;  %vm889_vm6 = vweird.f32 %v1436_v2 }
 0x6ce   : > { %vm890_vm13 = vmor %vm888_vm12, %vm889_vm6 }
 0x6cf   : > { %v884_v4 = vmul.f32 %v1436_v2, %v883_v3 }
 0x6d1   : > { %v885_v5 = vmul.f32 0.5, %v884_v4 }
 0x6d3   : > { %v886_v6 = vsub.f32 1.5, %v885_v5 }
 0x6d5   : > { %v887_v7 = vmul.f32 %v1436_v2, %v886_v6 }
 0x6d7   : > { %v891_v10 = vsel %vm890_vm13, %v1436_v2, %v887_v7 }
 0x6d8   : > { %v892_v11 = vmul.f32 %v891_v10, %v875_v58 }
 0x6da   : > { %v894_v9 = vmul.f32 %v893_v8, %v892_v11 }
 0x6dc   : > { %v896_v13 = vadd.f32 %v895_v12, %v894_v9 }
 0x6de   : > { %v897_v14 = vpack.c.bf16 %v896_v13, %v896_v13 }
 0x6e0   : > { %1260 = vmatmul.msk.bf16.vlgmr.msra.gmra.mxu2 %vm451_vm1, %v897_v14 }
 0x763   : > { %v929_v16 = vpop.f32.mrf.mxu2 }
 0x764   : > { %v930_v17 = vadd.f32 %v1414_v15, %v929_v16 }
 0x766   : > { %v934_v18 = vmul.f32 0.70710677, %v930_v17  ;;  %v933_v57 = vmul.f32 0.5, %v930_v17 }
 0x768   : > { %v937_v19 = vand.u32 2147483647, %v934_v18  ;;  %vm935_vm3 = vcmp.ge.f32.partialorder %v934_v18, 0.0 }
 0x769   : > { %v936_v55 = vsel %vm935_vm3, 1.0, %v1638_v54 }
 0x76a   : > { %v938_v20 = vmul.f32 0.3275911, %v937_v19  ;;  %v964_v39 = vsub.f32 0.0, %v937_v19 }
 0x76b   : > { %v931_v21 = vpop.f32.mrf.mxu2 }
 0x76c   : > { %v939_v22 = vadd.f32 1.0, %v938_v20  ;;  %v965_v34 = vmul.f32 %v964_v39, %v937_v19 }
 0x76e   : > { %1437 = vrcp.f32 %v939_v22  ;;  %v951_v30 = vand.u32 2147483648, %v939_v22  ;;  %v949_v33 = vand.u32 2147483647, %v939_v22  ;;  %vm945_vm15 = vweird.f32 %v939_v22 }
 0x76f   : > { %v966_v44 = vmul.f32 1.442695, %v965_v34 }
 0x770   : > { %v952_v36 = vor.u32 1.1754944e-38, %v951_v30  ;;  %vm950_vm2 = vcmp.eq.f32.partialorder %v949_v33, 8.507059e+37 }
 0x771   : > { %1439 = vpow2.f32 %v966_v44 }
 0x774   : > { %v1438_v26 = vpop.eup %1437 }
 0x775   : > { %v941_v27 = vmul.f32 %v1438_v26, %v939_v22  ;;  %vm946_vm14 = vweird.f32 %v1438_v26 }
 0x776   : > { %vm947_vm0 = vmor %vm945_vm15, %vm946_vm14 }
 0x777   : > { %v942_v29 = vsub.f32 1.0, %v941_v27  ;;  %v1440_v51 = vpop.eup %1439 }
 0x779   : > { %v943_v32 = vmul.f32 %v1438_v26, %v942_v29 }
 0x77b   : > { %v944_v35 = vadd.f32 %v1438_v26, %v943_v32 }
 0x77d   : > { %v948_v37 = vsel %vm947_vm0, %v1438_v26, %v944_v35 }
 0x77e   : > { %v953_v38 = vsel %vm950_vm2, %v952_v36, %v948_v37 }
 0x77f   : > { %v955_v40 = vmul.f32 1.0614054, %v953_v38 }
 0x781   : > { %v956_v41 = vadd.f32 -1.4531521, %v955_v40 }
 0x783   : > { %v957_v42 = vmul.f32 %v956_v41, %v953_v38 }
 0x785   : > { %v958_v43 = vadd.f32 1.4214138, %v957_v42 }
 0x787   : > { %v959_v45 = vmul.f32 %v958_v43, %v953_v38 }
 0x789   : > { %v960_v46 = vadd.f32 -0.28449672, %v959_v45 }
 0x78b   : > { %v961_v47 = vmul.f32 %v960_v46, %v953_v38 }
 0x78d   : > { %v962_v48 = vadd.f32 0.2548296, %v961_v47 }
 0x78f   : > { %v963_v49 = vmul.f32 %v962_v48, %v953_v38 }
 0x791   : > { %v968_v50 = vmul.f32 %v1440_v51, %v963_v49 }
 0x793   : > { %v969_v52 = vsub.f32 1.0, %v968_v50 }
 0x795   : > { %v970_v56 = vmul.f32 %v969_v52, %v936_v55 }
 0x797   : > { %v971_v58 = vadd.f32 1.0, %v970_v56 }
 0x799   : > { %v972_v59 = vmul.f32 %v971_v58, %v933_v57 }
 0x79b   : > { %v973_v60 = vpack.c.bf16 %v972_v59, %v972_v59 }
 0x79d   : > { %1277 = vmatmul.msk.bf16.vlgmr.msra.gmra.mxu3 %vm1007_vm4, %v973_v60 }
 0x820   : > { %v1020_v62 = vpop.f32.mrf.mxu3 }
 0x821   : > { %v1021_v1 = vadd.f32 %v1020_v62, %v982_v61 }
 0x823   : > { %v1024_v63 = vadd.f32 %v1021_v1, %v1953_v53 }
 0x824   : > { %1029 = sbr.rel (%p1278_p0) target bundleno = 2090 (0x82a), region = 64 }
 0x825   : > { %1025 = vst.msk [vmem:[#allocation2] sm:$0xff] %vm451_vm1, %v1024_v63 }
 0x828   : > { %v1022_v0 = vpop.f32.mrf.mxu3 }
 0x829   : > { %1030 = vst.msk [vmem:[%s1874_s1] sm:$0xff] %vm451_vm1, %v1024_v63 }
 0x82a PF: > { %s2077_s9 = sld [smem:[#allocation14_spill]]  ;;  %s1044_s24 = sshll.u32 %s1874_s1, 4  ;;  %s1045_s24 = int_to_ptr.vmem [resolvable:$true] %s1044_s24 }
 0x82b   : > { %s2079_s23 = sld [smem:[#allocation26_spill]]  ;;  %s1032_s21 = scalar_lea.sflag [#allocation5], %s1832_s0 }
 0x830   : > { %s1280_s14 = sshll.u32 %s2077_s9, 3 }
 0x831   : > { %s1042_s6 = scalar_lea.hbm %s2079_s23, %s1280_s14  ;;  %s1521_s29 = scalar_lea.hbm %s2079_s23, 16 }
 0x832   : > { %s1046_s8 = sshll.u32 %s1042_s6, 4  ;;  %s1047_s8 = int_to_ptr.hbm [resolvable:$true] %s1046_s8 }
 0x833   : > { %s1515_s30 = sshra.s32 %s1047_s8, 4  ;;  %s1516_s30 = int_to_ptr.hbm [resolvable:$true] %s1515_s30 }
 0x834   : > { %s1517_s27 = scalar_lea.hbm %s1516_s30, 8  ;;  %p1522_p4 = scmp.lt.s32.totalorder %s1516_s30, %s2079_s23 }
 0x835   : > { %p1518_p2 = scmp.ne.s32.totalorder %s1516_s30, %s1517_s27  ;;  %p1523_p11 = scmp.lt.s32.totalorder %s1521_s29, %s1517_s27 }
 0x837   : > { %p1519_p5 = pnand %p1518_p2, %p1759_p8  ;;  %p1524_p12 = por %p1523_p11, %p1522_p4 }
 0x839   : > { %p1520_p7 = pneg %p1519_p5 }
 0x83b   : > { %p1525_p13 = pnand %p1524_p12, %p1520_p7 }
 0x83d   : > { %1528 = shalt.err (!%p1525_p13)
}
 0x83e   : > { %1301 = dma.vmem_to_hbm [thread:$0]  (%p1759_p8), %s1045_s24, 128, %s1047_s8, %s1032_s21  }
 0x83f PF: > { %s2080_s1 = sld [smem:[#allocation12_spill]]  ;;  %p1315_p1 = scmp.ge.s32.totalorder %s1627_s11, 2 }
 0x841   : > { %p1311_p3 = pnand %p1315_p1, %p1763_p9 }
 0x843   : > { %p1312_p10 = pneg %p1311_p3 }
 0x845   : > { %s1058_s16 = sand.u32 1, %s2080_s1  }
 0x846   : > { %s1059_s20 = scalar_lea.sflag [#allocation5], %s1058_s16 }
 0x847   : > { %1582 = dma.done.wait (%p1312_p10), %s1059_s20, 128  }
 0x848   : > { %1584 = vsyncadd (%p1312_p10), %s1059_s20, 4294967168  ;;  %s26_s11 = sadd.s32 1, %s1627_s11   ;;  %s2082_s13 = sld [smem:[#allocation13_spill]] }
 0x849   : > { %p23_p6 = scmp.ge.s32.totalorder %s26_s11, 6   ;;  %s2083_s29 = sld [smem:[#allocation21_spill]] }
 0x84a   : > { %s2084_s30 = sld [smem:[#allocation15_spill]]  ;;  %s2088_s24 = smov %s1591_s25 }
 0x84b   : > { %s2085_s8 = sld [smem:[#allocation16_spill]]  ;;  %s2089_s25 = smov %s1595_s26 }
 0x84c   : > { %s2086_s9 = sld [smem:[#allocation19_spill]]  ;;  %s2090_s26 = smov %s1812_s12 }
 0x84d   : > { %s2087_s10 = sld [smem:[#allocation20_spill]]  ;;  %s2091_s27 = smov %s1603_s28 }
 0x84e   : > { %s2092_s28 = smov %s2082_s13  ;;  %25 = sbr.rel (!%p23_p6) target bundleno = 17 (0x11), region = 129 }
 0x853   :  { %1065 = vsyncpa [#allocation4], 1 }
 0x854   :  { %1067 = vsyncpa [#allocation4 + $0x1], 1 }
 0x855   :  { %1068 = vsyncpa [#allocation7], 1 }
 0x856   :  { %1070 = vsyncpa [#allocation7 + $0x1], 1 }
 0x857   :  { %1071 = vsyncpa [#allocation5], 1 }
 0x858   :  { %1073 = vsyncpa [#allocation5 + $0x1], 1 }

</bundles_post_ra>
